<compile_context>
chip_gen: v5e
topology: v5e:2x2
jax: 0.10.0
libtpu: 0.0.40
codegen_flags: <defaults>
</compile_context>

<pallas_src>
import jax
import jax.numpy as jnp
from jax.experimental import pallas as pl
from jax.experimental.pallas import tpu as pltpu

NODES = 16            # GATConv in/out channels (and number of graph nodes here)
LAYER_REPEATS = 2
NEG_SLOPE = 0.2       # GATConv default negative_slope

# Row offsets into the packed [SLAB_ROWS, NODES] f32 slab (all multiples of 8,
# so every slice below is a cheap sublane-aligned view -> one DMA total).
R_X = 0
R_ADJ = 16
R_E0 = 32
R_E1 = 48
R_WSTD = 64
R_WTOP = 80          # skip-layer weight, rows applied to in_x
R_WBOT = 96          # skip-layer weight, rows applied to x
R_DSTC = 112         # att_dst stored as columns: col 0 = std, col 1 = skip
R_VEC = 128          # rows: 0 att_src_std, 1 bias_std, 2 att_src_skip, 3 bias_skip
SLAB_ROWS = 144


# ----------------------------------------------------------------------------
# Pallas kernel: the full GATSkip_WeightShare forward on a densified graph
# ----------------------------------------------------------------------------
def _gat_skip_kernel(slab_ref, vedge_ref, o_ref):
    N = NODES
    f32 = jnp.float32
    bf16 = jnp.bfloat16

    # ---- single packed slab -> static sublane-aligned views -----------------
    x0 = slab_ref[R_X:R_X + N, :]                       # [N, F] node features
    adj = slab_ref[R_ADJ:R_ADJ + N, :]                  # [N, N]  (dst, src)
    e0 = slab_ref[R_E0:R_E0 + N, :]                     # [N, N] edge feature 0
    e1 = slab_ref[R_E1:R_E1 + N, :]                     # [N, N] edge feature 1
    w_std_b = slab_ref[R_WSTD:R_WSTD + N, :].astype(bf16)
    w_top_b = slab_ref[R_WTOP:R_WTOP + N, :].astype(bf16)
    w_bot_b = slab_ref[R_WBOT:R_WBOT + N, :].astype(bf16)
    dst_cols = slab_ref[R_DSTC:R_DSTC + N, :]           # [N, N], col 0/1 = att_dst std/skip
    vec = slab_ref[R_VEC:R_VEC + N, :]                  # small row vectors

    mask = adj > 0.0
    neg_inf = f32(-1e30)
    ones_nn_b = jnp.ones((N, N), bf16)                  # hoisted ones-matmul operand

    # per-layer dense edge-attention bias: alpha[i,j] = edge_attr[i,j,:] . v_edge
    # (v_edge scalars from SMEM -> two cheap scalar*matrix madds on the VPU)
    alpha_std = vedge_ref[0, 0] * e0 + vedge_ref[0, 1] * e1
    alpha_skip = vedge_ref[1, 0] * e0 + vedge_ref[1, 1] * e1

    def gat_core(h, lyr, alpha, apply_tanh):
        h_b = h.astype(bf16)                            # bf16 MXU operands, f32 accum
        att_src = vec[2 * lyr:2 * lyr + 1, :]           # [1, F]
        bias = vec[2 * lyr + 1:2 * lyr + 2, :]          # [1, F]

        # a_dst[i] = sum_f h[i,f] * att_dst[f]  -- on the (idle) MXU, not the XLU
        dcol_b = dst_cols[:, lyr:lyr + 1].astype(bf16)  # [F, 1]
        a_dst = jnp.dot(h_b, dcol_b, preferred_element_type=f32)        # [N, 1]

        # a_src broadcast along dst rows via a ones-matmul (also MXU):
        #   a_src_bcast[i, j] = sum_f h[j, f] * att_src[f]
        a_src_bcast = jax.lax.dot_general(
            ones_nn_b, (h * att_src).astype(bf16),
            dimension_numbers=(((1,), (1,)), ((), ())),
            preferred_element_type=f32)                                  # [N, N]

        logits = a_dst + a_src_bcast + alpha
        logits = jnp.maximum(logits, NEG_SLOPE * logits)                 # LeakyReLU
        logits = jnp.where(mask, logits, neg_inf)                        # masked softmax (per dst row)
        m = jnp.max(logits, axis=-1, keepdims=True)
        e = jnp.exp(logits - m)                                          # masked entries underflow to 0
        denom = jnp.maximum(jnp.sum(e, axis=-1, keepdims=True), 1e-30)   # defensive guard
        attn = e * pl.reciprocal(denom, approx=True)                     # EUP, not VALU

        out = jnp.dot(attn.astype(bf16), h_b, preferred_element_type=f32) + bias
        return jnp.tanh(out) if apply_tanh else out

    # LAYER_REPEATS applications of the SAME (weight-shared) std layer + Tanh
    x0_b = x0.astype(bf16)
    x_b = x0_b
    for _ in range(LAYER_REPEATS):
        h = jnp.dot(x_b, w_std_b, preferred_element_type=f32)
        x = gat_core(h, 0, alpha_std, apply_tanh=True)
        x_b = x.astype(bf16)

    # skip layer on cat([x0, x], 1):  cat @ W_skip == x0 @ W_top + x @ W_bot
    h = (jnp.dot(x0_b, w_top_b, preferred_element_type=f32)
         + jnp.dot(x_b, w_bot_b, preferred_element_type=f32))
    o_ref[...] = gat_core(h, 1, alpha_skip, apply_tanh=False)


def gat_skip_forward(slab, vedge):
    """Single fused pallas_call for the whole forward pass (one VMEM DMA + SMEM scalars)."""
    assert slab.shape == (SLAB_ROWS, NODES) and slab.dtype == jnp.float32
    assert vedge.shape == (2, 2)
    bytes_accessed = SLAB_ROWS * NODES * 4 + 16 + NODES * NODES * 4
    return pl.pallas_call(
        _gat_skip_kernel,
        out_shape=jax.ShapeDtypeStruct((NODES, NODES), jnp.float32),
        in_specs=[pl.BlockSpec(memory_space=pltpu.MemorySpace.VMEM),
                  pl.BlockSpec(memory_space=pltpu.MemorySpace.SMEM)],
        out_specs=pl.BlockSpec(memory_space=pltpu.MemorySpace.VMEM),
        cost_estimate=pl.CostEstimate(flops=90_000, transcendentals=1_400,
                                      bytes_accessed=bytes_accessed),
    )(slab, vedge)


# ----------------------------------------------------------------------------
# Glue: parameters, one-time packing, graph densification (plain JAX, off the
# per-step path)
# ----------------------------------------------------------------------------
def init_gat_params(key, fin, fout, edge_dim=2, scale=0.1):
    ks = jax.random.split(key, 6)
    W = scale * jax.random.normal(ks[0], (fin, fout), jnp.float32)        # lin.weight^T
    att_src = scale * jax.random.normal(ks[1], (1, fout), jnp.float32)
    att_dst = scale * jax.random.normal(ks[2], (1, fout), jnp.float32)
    bias = scale * jax.random.normal(ks[3], (1, fout), jnp.float32)
    W_edge = scale * jax.random.normal(ks[4], (fout, edge_dim), jnp.float32)  # lin_edge.weight
    att_edge = scale * jax.random.normal(ks[5], (fout,), jnp.float32)
    # fold lin_edge + att_edge dot into one 2-vector:
    #   alpha_edge = (edge_attr @ W_edge.T) . att_edge = edge_attr . (W_edge.T @ att_edge)
    v_edge = W_edge.T @ att_edge                                          # [edge_dim]
    return dict(W=W, att_src=att_src, att_dst=att_dst, bias=bias, v_edge=v_edge)


def pack_slab(x, adj, e_dense, params):
    """Pack everything the kernel needs into one [144,16] f32 slab + [2,2] SMEM scalars."""
    n = NODES
    assert x.shape == (n, n) and adj.shape == (n, n) and e_dense.shape == (n, n, 2)
    p_std, p_skip = params["std"], params["skip"]

    dst_cols = jnp.zeros((n, n), jnp.float32)
    dst_cols = dst_cols.at[:, 0].set(p_std["att_dst"][0])
    dst_cols = dst_cols.at[:, 1].set(p_skip["att_dst"][0])

    vec = jnp.zeros((n, n), jnp.float32)
    vec = vec.at[0].set(p_std["att_src"][0])
    vec = vec.at[1].set(p_std["bias"][0])
    vec = vec.at[2].set(p_skip["att_src"][0])
    vec = vec.at[3].set(p_skip["bias"][0])

    slab = jnp.concatenate(
        [x, adj, e_dense[:, :, 0], e_dense[:, :, 1],
         p_std["W"], p_skip["W"][:n, :], p_skip["W"][n:, :],
         dst_cols, vec], axis=0).astype(jnp.float32)                     # [144, 16]
    vedge = jnp.stack([p_std["v_edge"], p_skip["v_edge"]]).astype(jnp.float32)  # [2, 2]
    return slab, vedge


def build_dense_graph(edge_index, edge_attr, n):
    """Densify edge_index/edge_attr; add self-loops (fill_value='mean', like PyG GATConv)."""
    src, dst = edge_index[0], edge_index[1]
    edim = edge_attr.shape[1]
    adj = jnp.zeros((n, n), jnp.float32).at[dst, src].set(1.0)            # [dst, src]
    e_dense = jnp.zeros((n, n, edim), jnp.float32).at[dst, src].set(edge_attr)
    deg = jnp.zeros((n,), jnp.float32).at[dst].add(1.0)
    sum_attr = jnp.zeros((n, edim), jnp.float32).at[dst].add(edge_attr)
    mean_attr = sum_attr / jnp.maximum(deg, 1.0)[:, None]
    idx = jnp.arange(n)
    adj = adj.at[idx, idx].set(1.0)
    e_dense = e_dense.at[idx, idx].set(mean_attr)
    return adj, e_dense


# ----------------------------------------------------------------------------
# Pure-JAX f32 reference (same dense math, weight-shared) for a correctness check
# ----------------------------------------------------------------------------
def _gat_layer_ref(x, p, adj, e_dense, apply_tanh):
    alpha_edge = jnp.einsum("ijk,k->ij", e_dense, p["v_edge"])
    h = x @ p["W"]
    a_src = jnp.sum(h * p["att_src"], axis=-1)
    a_dst = jnp.sum(h * p["att_dst"], axis=-1)
    logits = a_dst[:, None] + a_src[None, :] + alpha_edge
    logits = jnp.where(logits > 0, logits, NEG_SLOPE * logits)
    logits = jnp.where(adj > 0, logits, -1e30)
    attn = jax.nn.softmax(logits, axis=-1)
    out = attn @ h + p["bias"]
    return jnp.tanh(out) if apply_tanh else out


def gat_skip_forward_ref(x, adj, e_dense, params):
    in_x = x
    for _ in range(LAYER_REPEATS):                     # shared std layer, applied twice
        x = _gat_layer_ref(x, params["std"], adj, e_dense, True)
    xcat = jnp.concatenate([in_x, x], axis=1)
    return _gat_layer_ref(xcat, params["skip"], adj, e_dense, False)


# ----------------------------------------------------------------------------
if __name__ == "__main__":
    key = jax.random.PRNGKey(0)
    n = NODES

    # data['x']: node features [num_nodes, NODES]
    key, kx, ke, kp = jax.random.split(key, 4)
    x = jax.random.normal(kx, (n, NODES), jnp.float32)
    assert x.shape[0] == NODES, "kernel is specialized to NODES=16 nodes"

    # data['edge_index']: directed edges i -> (i+1), (i+3), (i+7) mod n (no self loops, no dups)
    base = jnp.arange(n)
    src = jnp.concatenate([base, base, base])
    dst = jnp.concatenate([(base + 1) % n, (base + 3) % n, (base + 7) % n])
    edge_index = jnp.stack([src, dst]).astype(jnp.int32)                  # [2, E]
    # data['edge_attr']: [E, 2]
    edge_attr = jax.random.normal(ke, (edge_index.shape[1], 2), jnp.float32)

    # parameters: ONE shared std layer + one skip layer (WeightShare semantics)
    k_std, k_skip = jax.random.split(kp, 2)
    params = {
        "std": init_gat_params(k_std, NODES, NODES),
        "skip": init_gat_params(k_skip, NODES * 2, NODES),
    }

    # one-time data/param prep (outside the kernel / per-step path)
    adj, e_dense = build_dense_graph(edge_index, edge_attr, n)
    slab, vedge = pack_slab(x, adj, e_dense, params)

    out = gat_skip_forward(slab, vedge)
    out = jax.block_until_ready(out)

    ref = jax.block_until_ready(gat_skip_forward_ref(x, adj, e_dense, params))
    assert out.shape == (n, NODES)
    # bf16 MXU operands + approximate EUP reciprocal give ~1e-3..1e-2 absolute
    # deviation from the pure-f32 reference; tolerance set accordingly.
    assert jnp.allclose(out, ref, atol=2e-2, rtol=2e-2), "Pallas output mismatch vs reference"

    print("KERNEL_OK")
</pallas_src>

<mosaic_0001>
module attributes {stable_mosaic.version = 11 : i64} {
  func.func @_gat_skip_kernel(%arg0: memref<144x16xf32, #tpu.memory_space<vmem>>, %arg1: memref<2x2xf32, #tpu.memory_space<smem>>, %arg2: memref<16x16xf32, #tpu.memory_space<vmem>>) attributes {dimension_semantics = [], scalar_prefetch = 0 : i64, scratch_operands = 0 : i64, tpu.core_type = #tpu.core_type<tc>} {
    %c0 = arith.constant 0 : index
    %c0_0 = arith.constant 0 : index
    %0 = vector.load %arg0[%c0, %c0_0] : memref<144x16xf32, #tpu.memory_space<vmem>>, vector<16x16xf32>
    %c16 = arith.constant 16 : index
    %c0_1 = arith.constant 0 : index
    %1 = vector.load %arg0[%c16, %c0_1] : memref<144x16xf32, #tpu.memory_space<vmem>>, vector<16x16xf32>
    %c32 = arith.constant 32 : index
    %c0_2 = arith.constant 0 : index
    %2 = vector.load %arg0[%c32, %c0_2] : memref<144x16xf32, #tpu.memory_space<vmem>>, vector<16x16xf32>
    %c48 = arith.constant 48 : index
    %c0_3 = arith.constant 0 : index
    %3 = vector.load %arg0[%c48, %c0_3] : memref<144x16xf32, #tpu.memory_space<vmem>>, vector<16x16xf32>
    %c64 = arith.constant 64 : index
    %c0_4 = arith.constant 0 : index
    %4 = vector.load %arg0[%c64, %c0_4] : memref<144x16xf32, #tpu.memory_space<vmem>>, vector<16x16xf32>
    %5 = arith.truncf %4 : vector<16x16xf32> to vector<16x16xbf16>
    %c80 = arith.constant 80 : index
    %c0_5 = arith.constant 0 : index
    %6 = vector.load %arg0[%c80, %c0_5] : memref<144x16xf32, #tpu.memory_space<vmem>>, vector<16x16xf32>
    %7 = arith.truncf %6 : vector<16x16xf32> to vector<16x16xbf16>
    %c96 = arith.constant 96 : index
    %c0_6 = arith.constant 0 : index
    %8 = vector.load %arg0[%c96, %c0_6] : memref<144x16xf32, #tpu.memory_space<vmem>>, vector<16x16xf32>
    %9 = arith.truncf %8 : vector<16x16xf32> to vector<16x16xbf16>
    %c112 = arith.constant 112 : index
    %c0_7 = arith.constant 0 : index
    %10 = vector.load %arg0[%c112, %c0_7] : memref<144x16xf32, #tpu.memory_space<vmem>>, vector<16x16xf32>
    %c128 = arith.constant 128 : index
    %c0_8 = arith.constant 0 : index
    %11 = vector.load %arg0[%c128, %c0_8] : memref<144x16xf32, #tpu.memory_space<vmem>>, vector<16x16xf32>
    %cst = arith.constant 0.000000e+00 : f32
    %12 = vector.broadcast %cst : f32 to vector<16x16xf32>
    %13 = arith.cmpf ogt, %1, %12 : vector<16x16xf32>
    %cst_9 = arith.constant 1.000000e+00 : bf16
    %14 = vector.broadcast %cst_9 : bf16 to vector<16x16xbf16>
    %c0_10 = arith.constant 0 : index
    %c0_11 = arith.constant 0 : index
    %15 = memref.load %arg1[%c0_10, %c0_11] : memref<2x2xf32, #tpu.memory_space<smem>>
    %16 = vector.broadcast %15 : f32 to vector<16x16xf32>
    %17 = arith.mulf %16, %2 : vector<16x16xf32>
    %c0_12 = arith.constant 0 : index
    %c1 = arith.constant 1 : index
    %18 = memref.load %arg1[%c0_12, %c1] : memref<2x2xf32, #tpu.memory_space<smem>>
    %19 = vector.broadcast %18 : f32 to vector<16x16xf32>
    %20 = arith.mulf %19, %3 : vector<16x16xf32>
    %21 = arith.addf %17, %20 : vector<16x16xf32>
    %c1_13 = arith.constant 1 : index
    %c0_14 = arith.constant 0 : index
    %22 = memref.load %arg1[%c1_13, %c0_14] : memref<2x2xf32, #tpu.memory_space<smem>>
    %23 = vector.broadcast %22 : f32 to vector<16x16xf32>
    %24 = arith.mulf %23, %2 : vector<16x16xf32>
    %c1_15 = arith.constant 1 : index
    %c1_16 = arith.constant 1 : index
    %25 = memref.load %arg1[%c1_15, %c1_16] : memref<2x2xf32, #tpu.memory_space<smem>>
    %26 = vector.broadcast %25 : f32 to vector<16x16xf32>
    %27 = arith.mulf %26, %3 : vector<16x16xf32>
    %28 = arith.addf %24, %27 : vector<16x16xf32>
    %29 = arith.truncf %0 : vector<16x16xf32> to vector<16x16xbf16>
    %cst_17 = arith.constant dense<0.000000e+00> : vector<16x16xf32>
    %30 = tpu.matmul %29, %5, %cst_17 {dimension_numbers = #tpu.dot_dimension_numbers<[1], [0], [0], [1], [0, 0, 1, 1], [], []>} : vector<16x16xbf16>, vector<16x16xbf16>, vector<16x16xf32> -> vector<16x16xf32>
    %31 = arith.truncf %30 : vector<16x16xf32> to vector<16x16xbf16>
    %32 = vector.extract_strided_slice %11 {offsets = [0, 0], sizes = [1, 16], strides = [1, 1]} : vector<16x16xf32> to vector<1x16xf32>
    %33 = vector.extract_strided_slice %11 {offsets = [1, 0], sizes = [1, 16], strides = [1, 1]} : vector<16x16xf32> to vector<1x16xf32>
    %34 = vector.extract_strided_slice %10 {offsets = [0, 0], sizes = [16, 1], strides = [1, 1]} : vector<16x16xf32> to vector<16x1xf32>
    %35 = arith.truncf %34 : vector<16x1xf32> to vector<16x1xbf16>
    %cst_18 = arith.constant dense<0.000000e+00> : vector<16x1xf32>
    %36 = tpu.matmul %31, %35, %cst_18 {dimension_numbers = #tpu.dot_dimension_numbers<[1], [0], [0], [1], [0, 0, 1, 1], [], []>} : vector<16x16xbf16>, vector<16x1xbf16>, vector<16x1xf32> -> vector<16x1xf32>
    %37 = vector.broadcast %32 : vector<1x16xf32> to vector<16x16xf32>
    %38 = arith.mulf %30, %37 : vector<16x16xf32>
    %39 = arith.truncf %38 : vector<16x16xf32> to vector<16x16xbf16>
    %cst_19 = arith.constant dense<0.000000e+00> : vector<16x16xf32>
    %40 = tpu.matmul %14, %39, %cst_19 {dimension_numbers = #tpu.dot_dimension_numbers<[1], [1], [0], [0], [0, 0, 1, 0], [], []>} : vector<16x16xbf16>, vector<16x16xbf16>, vector<16x16xf32> -> vector<16x16xf32>
    %41 = vector.broadcast %36 : vector<16x1xf32> to vector<16x16xf32>
    %42 = arith.addf %41, %40 : vector<16x16xf32>
    %43 = arith.addf %42, %21 : vector<16x16xf32>
    %cst_20 = arith.constant 2.000000e-01 : f32
    %44 = vector.broadcast %cst_20 : f32 to vector<16x16xf32>
    %45 = arith.mulf %44, %43 : vector<16x16xf32>
    %46 = arith.maximumf %43, %45 : vector<16x16xf32>
    %cst_21 = arith.constant -1.000000e+30 : f32
    %47 = vector.broadcast %cst_21 : f32 to vector<16x16xf32>
    %48 = arith.select %13, %46, %47 : vector<16x16xi1>, vector<16x16xf32>
    %cst_22 = arith.constant dense<0xFF800000> : vector<16xf32>
    %49 = vector.multi_reduction <maximumf>, %48, %cst_22 [1] : vector<16x16xf32> to vector<16xf32>
    %50 = vector.shape_cast %49 : vector<16xf32> to vector<16x1xf32>
    %51 = vector.broadcast %50 : vector<16x1xf32> to vector<16x16xf32>
    %52 = arith.subf %48, %51 : vector<16x16xf32>
    %53 = math.exp %52 : vector<16x16xf32>
    %cst_23 = arith.constant dense<0.000000e+00> : vector<16xf32>
    %54 = vector.multi_reduction <add>, %53, %cst_23 [1] : vector<16x16xf32> to vector<16xf32>
    %55 = vector.shape_cast %54 : vector<16xf32> to vector<16x1xf32>
    %cst_24 = arith.constant 1.000000e-30 : f32
    %56 = vector.broadcast %cst_24 : f32 to vector<16x1xf32>
    %57 = arith.maximumf %55, %56 : vector<16x1xf32>
    %58 = tpu.reciprocal %57 {approx = true} : vector<16x1xf32> -> vector<16x1xf32>
    %59 = vector.broadcast %58 : vector<16x1xf32> to vector<16x16xf32>
    %60 = arith.mulf %53, %59 : vector<16x16xf32>
    %61 = arith.truncf %60 : vector<16x16xf32> to vector<16x16xbf16>
    %cst_25 = arith.constant dense<0.000000e+00> : vector<16x16xf32>
    %62 = tpu.matmul %61, %31, %cst_25 {dimension_numbers = #tpu.dot_dimension_numbers<[1], [0], [0], [1], [0, 0, 1, 1], [], []>} : vector<16x16xbf16>, vector<16x16xbf16>, vector<16x16xf32> -> vector<16x16xf32>
    %63 = vector.broadcast %33 : vector<1x16xf32> to vector<16x16xf32>
    %64 = arith.addf %62, %63 : vector<16x16xf32>
    %65 = math.tanh %64 : vector<16x16xf32>
    %66 = arith.truncf %65 : vector<16x16xf32> to vector<16x16xbf16>
    %cst_26 = arith.constant dense<0.000000e+00> : vector<16x16xf32>
    %67 = tpu.matmul %66, %5, %cst_26 {dimension_numbers = #tpu.dot_dimension_numbers<[1], [0], [0], [1], [0, 0, 1, 1], [], []>} : vector<16x16xbf16>, vector<16x16xbf16>, vector<16x16xf32> -> vector<16x16xf32>
    %68 = arith.truncf %67 : vector<16x16xf32> to vector<16x16xbf16>
    %69 = vector.extract_strided_slice %11 {offsets = [0, 0], sizes = [1, 16], strides = [1, 1]} : vector<16x16xf32> to vector<1x16xf32>
    %70 = vector.extract_strided_slice %11 {offsets = [1, 0], sizes = [1, 16], strides = [1, 1]} : vector<16x16xf32> to vector<1x16xf32>
    %71 = vector.extract_strided_slice %10 {offsets = [0, 0], sizes = [16, 1], strides = [1, 1]} : vector<16x16xf32> to vector<16x1xf32>
    %72 = arith.truncf %71 : vector<16x1xf32> to vector<16x1xbf16>
    %cst_27 = arith.constant dense<0.000000e+00> : vector<16x1xf32>
    %73 = tpu.matmul %68, %72, %cst_27 {dimension_numbers = #tpu.dot_dimension_numbers<[1], [0], [0], [1], [0, 0, 1, 1], [], []>} : vector<16x16xbf16>, vector<16x1xbf16>, vector<16x1xf32> -> vector<16x1xf32>
    %74 = vector.broadcast %69 : vector<1x16xf32> to vector<16x16xf32>
    %75 = arith.mulf %67, %74 : vector<16x16xf32>
    %76 = arith.truncf %75 : vector<16x16xf32> to vector<16x16xbf16>
    %cst_28 = arith.constant dense<0.000000e+00> : vector<16x16xf32>
    %77 = tpu.matmul %14, %76, %cst_28 {dimension_numbers = #tpu.dot_dimension_numbers<[1], [1], [0], [0], [0, 0, 1, 0], [], []>} : vector<16x16xbf16>, vector<16x16xbf16>, vector<16x16xf32> -> vector<16x16xf32>
    %78 = vector.broadcast %73 : vector<16x1xf32> to vector<16x16xf32>
    %79 = arith.addf %78, %77 : vector<16x16xf32>
    %80 = arith.addf %79, %21 : vector<16x16xf32>
    %cst_29 = arith.constant 2.000000e-01 : f32
    %81 = vector.broadcast %cst_29 : f32 to vector<16x16xf32>
    %82 = arith.mulf %81, %80 : vector<16x16xf32>
    %83 = arith.maximumf %80, %82 : vector<16x16xf32>
    %cst_30 = arith.constant -1.000000e+30 : f32
    %84 = vector.broadcast %cst_30 : f32 to vector<16x16xf32>
    %85 = arith.select %13, %83, %84 : vector<16x16xi1>, vector<16x16xf32>
    %cst_31 = arith.constant dense<0xFF800000> : vector<16xf32>
    %86 = vector.multi_reduction <maximumf>, %85, %cst_31 [1] : vector<16x16xf32> to vector<16xf32>
    %87 = vector.shape_cast %86 : vector<16xf32> to vector<16x1xf32>
    %88 = vector.broadcast %87 : vector<16x1xf32> to vector<16x16xf32>
    %89 = arith.subf %85, %88 : vector<16x16xf32>
    %90 = math.exp %89 : vector<16x16xf32>
    %cst_32 = arith.constant dense<0.000000e+00> : vector<16xf32>
    %91 = vector.multi_reduction <add>, %90, %cst_32 [1] : vector<16x16xf32> to vector<16xf32>
    %92 = vector.shape_cast %91 : vector<16xf32> to vector<16x1xf32>
    %cst_33 = arith.constant 1.000000e-30 : f32
    %93 = vector.broadcast %cst_33 : f32 to vector<16x1xf32>
    %94 = arith.maximumf %92, %93 : vector<16x1xf32>
    %95 = tpu.reciprocal %94 {approx = true} : vector<16x1xf32> -> vector<16x1xf32>
    %96 = vector.broadcast %95 : vector<16x1xf32> to vector<16x16xf32>
    %97 = arith.mulf %90, %96 : vector<16x16xf32>
    %98 = arith.truncf %97 : vector<16x16xf32> to vector<16x16xbf16>
    %cst_34 = arith.constant dense<0.000000e+00> : vector<16x16xf32>
    %99 = tpu.matmul %98, %68, %cst_34 {dimension_numbers = #tpu.dot_dimension_numbers<[1], [0], [0], [1], [0, 0, 1, 1], [], []>} : vector<16x16xbf16>, vector<16x16xbf16>, vector<16x16xf32> -> vector<16x16xf32>
    %100 = vector.broadcast %70 : vector<1x16xf32> to vector<16x16xf32>
    %101 = arith.addf %99, %100 : vector<16x16xf32>
    %102 = math.tanh %101 : vector<16x16xf32>
    %103 = arith.truncf %102 : vector<16x16xf32> to vector<16x16xbf16>
    %cst_35 = arith.constant dense<0.000000e+00> : vector<16x16xf32>
    %104 = tpu.matmul %29, %7, %cst_35 {dimension_numbers = #tpu.dot_dimension_numbers<[1], [0], [0], [1], [0, 0, 1, 1], [], []>} : vector<16x16xbf16>, vector<16x16xbf16>, vector<16x16xf32> -> vector<16x16xf32>
    %cst_36 = arith.constant dense<0.000000e+00> : vector<16x16xf32>
    %105 = tpu.matmul %103, %9, %cst_36 {dimension_numbers = #tpu.dot_dimension_numbers<[1], [0], [0], [1], [0, 0, 1, 1], [], []>} : vector<16x16xbf16>, vector<16x16xbf16>, vector<16x16xf32> -> vector<16x16xf32>
    %106 = arith.addf %104, %105 : vector<16x16xf32>
    %107 = arith.truncf %106 : vector<16x16xf32> to vector<16x16xbf16>
    %108 = vector.extract_strided_slice %11 {offsets = [2, 0], sizes = [1, 16], strides = [1, 1]} : vector<16x16xf32> to vector<1x16xf32>
    %109 = vector.extract_strided_slice %11 {offsets = [3, 0], sizes = [1, 16], strides = [1, 1]} : vector<16x16xf32> to vector<1x16xf32>
    %110 = vector.extract_strided_slice %10 {offsets = [0, 1], sizes = [16, 1], strides = [1, 1]} : vector<16x16xf32> to vector<16x1xf32>
    %111 = arith.truncf %110 : vector<16x1xf32> to vector<16x1xbf16>
    %cst_37 = arith.constant dense<0.000000e+00> : vector<16x1xf32>
    %112 = tpu.matmul %107, %111, %cst_37 {dimension_numbers = #tpu.dot_dimension_numbers<[1], [0], [0], [1], [0, 0, 1, 1], [], []>} : vector<16x16xbf16>, vector<16x1xbf16>, vector<16x1xf32> -> vector<16x1xf32>
    %113 = vector.broadcast %108 : vector<1x16xf32> to vector<16x16xf32>
    %114 = arith.mulf %106, %113 : vector<16x16xf32>
    %115 = arith.truncf %114 : vector<16x16xf32> to vector<16x16xbf16>
    %cst_38 = arith.constant dense<0.000000e+00> : vector<16x16xf32>
    %116 = tpu.matmul %14, %115, %cst_38 {dimension_numbers = #tpu.dot_dimension_numbers<[1], [1], [0], [0], [0, 0, 1, 0], [], []>} : vector<16x16xbf16>, vector<16x16xbf16>, vector<16x16xf32> -> vector<16x16xf32>
    %117 = vector.broadcast %112 : vector<16x1xf32> to vector<16x16xf32>
    %118 = arith.addf %117, %116 : vector<16x16xf32>
    %119 = arith.addf %118, %28 : vector<16x16xf32>
    %cst_39 = arith.constant 2.000000e-01 : f32
    %120 = vector.broadcast %cst_39 : f32 to vector<16x16xf32>
    %121 = arith.mulf %120, %119 : vector<16x16xf32>
    %122 = arith.maximumf %119, %121 : vector<16x16xf32>
    %cst_40 = arith.constant -1.000000e+30 : f32
    %123 = vector.broadcast %cst_40 : f32 to vector<16x16xf32>
    %124 = arith.select %13, %122, %123 : vector<16x16xi1>, vector<16x16xf32>
    %cst_41 = arith.constant dense<0xFF800000> : vector<16xf32>
    %125 = vector.multi_reduction <maximumf>, %124, %cst_41 [1] : vector<16x16xf32> to vector<16xf32>
    %126 = vector.shape_cast %125 : vector<16xf32> to vector<16x1xf32>
    %127 = vector.broadcast %126 : vector<16x1xf32> to vector<16x16xf32>
    %128 = arith.subf %124, %127 : vector<16x16xf32>
    %129 = math.exp %128 : vector<16x16xf32>
    %cst_42 = arith.constant dense<0.000000e+00> : vector<16xf32>
    %130 = vector.multi_reduction <add>, %129, %cst_42 [1] : vector<16x16xf32> to vector<16xf32>
    %131 = vector.shape_cast %130 : vector<16xf32> to vector<16x1xf32>
    %cst_43 = arith.constant 1.000000e-30 : f32
    %132 = vector.broadcast %cst_43 : f32 to vector<16x1xf32>
    %133 = arith.maximumf %131, %132 : vector<16x1xf32>
    %134 = tpu.reciprocal %133 {approx = true} : vector<16x1xf32> -> vector<16x1xf32>
    %135 = vector.broadcast %134 : vector<16x1xf32> to vector<16x16xf32>
    %136 = arith.mulf %129, %135 : vector<16x16xf32>
    %137 = arith.truncf %136 : vector<16x16xf32> to vector<16x16xbf16>
    %cst_44 = arith.constant dense<0.000000e+00> : vector<16x16xf32>
    %138 = tpu.matmul %137, %107, %cst_44 {dimension_numbers = #tpu.dot_dimension_numbers<[1], [0], [0], [1], [0, 0, 1, 1], [], []>} : vector<16x16xbf16>, vector<16x16xbf16>, vector<16x16xf32> -> vector<16x16xf32>
    %139 = vector.broadcast %109 : vector<1x16xf32> to vector<16x16xf32>
    %140 = arith.addf %138, %139 : vector<16x16xf32>
    %c0_45 = arith.constant 0 : index
    %c0_46 = arith.constant 0 : index
    %141 = vector.load %arg2[%c0_45, %c0_46] : memref<16x16xf32, #tpu.memory_space<vmem>>, vector<16x16xf32>
    tpu.vector_store %arg2[%c0_45, %c0_46], %140 {strides = array<i32>} : memref<16x16xf32, #tpu.memory_space<vmem>>, vector<16x16xf32>,
    return
  }
}

</mosaic_0001>

<bundles_post_ra>
// kernel: tpu_custom_call.1
= control target key start
LH: loop header
LB: loop body
LE: loop exit
PB: predicated region body
PF: predicated region fallthrough
CT: control target
= control target key end

     0   :  { %7 = vsyncpa [#allocation4], 0  ;;  %s753_s0 = inlined_call_operand.vmem [shape: f32[144,16], index: 0, kind: input, shape index: {}]   ;;  %s754_s1 = inlined_call_operand.vmem [shape: f32[2,2], index: 1, kind: input, shape index: {}]   ;;  %s755_s2 = inlined_call_operand.hbm [shape: f32[16,16], index: 2, kind: output, shape index: {}]  }
   0x1   :  { %8 = vsyncpa [#allocation3], 0  ;;  %s16_s11 = sshll.u32 %s754_s1, 4  ;;  %s572_s12 = smov [#allocation2]   ;;  %s17_s11 = int_to_ptr.vmem [resolvable:$true] %s16_s11 }
   0x2   :  { %19 = dma.vmem_to_smem %s17_s11, 32, %s572_s12, [#allocation4]  }
   0x3   :  { %568 = dma.done.wait [#allocation4], 32  }
   0x4   :  { %569 = vsyncadd [#allocation4], 4294967264 }
   0x5   :  { %24 = sfence }
   0x6   :  { %v35_v0 = vld [vmem:[%s753_s0 + $0x40] sm:$0xff]  ;;  %v36_v1 = vld [vmem:[%s753_s0 + $0x48] sm:$0xff]  ;;  %vm70_vm0 = vcmask 130048   ;;  %v44_v6 = vld [vmem:[%s753_s0 + $0x70] sm:$0xff]  ;;  %v573_v9 = vmov 0   ;;  %s49_s26 = sld [smem:[#allocation2]] }
   0x7   :  { %v27_v2 = vld [vmem:[%s753_s0] sm:$0xff]  ;;  %v37_v3 = vpack.c.bf16 %v36_v1, %v35_v0  ;;  %v28_v4 = vld [vmem:[%s753_s0 + $0x8] sm:$0xff]  ;;  %v45_v7 = vld [vmem:[%s753_s0 + $0x78] sm:$0xff]  ;;  %498 = vset.pattern.permute.xlu0 %v573_v9  ;;  %499 = vset.pattern.permute.xlu1 %v573_v9  ;;  %v574_v19 = vmov 1065369472   ;;  %s475_s27 = sld [smem:[#allocation2 + $0x1]] }
   0x8   :  { %v609_v5 = vpack.c.bf16 %v28_v4, %v27_v2  ;;  %v619_v8 = vpack.c.bf16 %v45_v7, %v44_v6  ;;  %v626_v11 = vld [vmem:[%s753_s0 + $0x80] sm:$0xff]  ;;  %v645_v23 = vld [vmem:[%s753_s0 + $0x30] sm:$0xff]  ;;  %v654_v31 = vld [vmem:[%s753_s0 + $0x28] sm:$0xff]  ;;  %s575_s12 = smov 127   ;;  %s477_s20 = sld [smem:[#allocation2 + $0x81]] }
   0x9   :  { %81 = vmatpush.bf16.msra.mxu0 %v37_v3  ;;  %v629_v12 = vperm.slane %v626_v11, 0  ;;  %v640_v22 = vld [vmem:[%s753_s0 + $0x20] sm:$0xff]  ;;  %v659_v32 = vld [vmem:[%s753_s0 + $0x38] sm:$0xff]  ;;  %v667_v37 = vld [vmem:[%s753_s0 + $0x10] sm:$0xff]  ;;  %s576_s21 = smov [#allocation5]   ;;  %s462_s25 = sshll.u32 %s755_s2, 4  ;;  %s463_s25 = int_to_ptr.hbm [resolvable:$true] %s462_s25 }
   0xa   :  { %100 = vmatpush.bf16.msra.mxu1 %v619_v8  ;;  %vm47_vm1 = vcmp.gt.f32.partialorder %v667_v37, 0.0  ;;  %v679_v47 = vld [vmem:[%s753_s0 + $0x18] sm:$0xff]  ;;  %s460_s22 = sshll.u32 %s576_s21, 4  ;;  %s461_s22 = int_to_ptr.vmem [resolvable:$true] %s460_s22 }
   0xb   :  { %vm48_vm2 = vcmp.gt.f32.partialorder %v679_v47, 0.0 }
   0xc   :  { %478 = vmatmul.msk.bf16.vlgmr.msra.gmra.mxu0 %vm70_vm0, %v609_v5  ;;  %v50_v24 = vstv %s49_s26  ;;  %s577_s26 = smov 128  }
   0xd   :  { %207 = vmatpush.bf16.msrb.mxu0 %v37_v3  ;;  %v54_v25 = vstv %s475_s27  ;;  %v51_v26 = vmul.f32 %v50_v24, %v640_v22  ;;  %v52_v35 = vmul.f32 %v50_v24, %v654_v31  ;;  %s578_s27 = smov 8  }
   0xe   :  { %225 = vmatpush.bf16.msrb.mxu1 %v619_v8  ;;  %v55_v27 = vmul.f32 %v54_v25, %v645_v23  ;;  %v56_v36 = vmul.f32 %v54_v25, %v659_v32 }
  0x10   :  { %v649_v29 = vadd.f32 %v55_v27, %v51_v26  ;;  %v670_v39 = vadd.f32 %v56_v36, %v52_v35 }
  0x89   :  { %v83_v10 = vpop.f32.mrf.mxu0 }
  0x8a   :  { %v108_v14 = vmul.f32 %v629_v12, %v83_v10 }
  0x91   :  { %v85_v13 = vpop.f32.mrf.mxu0 }
  0x92   :  { %v88_v15 = vpack.c.bf16 %v85_v13, %v83_v10  ;;  %v109_v16 = vmul.f32 %v629_v12, %v85_v13  ;;  %v689_v10 = vperm.slane %v626_v11, 1 }
  0x94   :  { %479 = vmatmul.msk.bf16.vlgmr.msra.gmra.mxu1 %vm70_vm0, %v88_v15  ;;  %187 = vmatpush.bf16.msra.mxu3 %v88_v15  ;;  %v110_v17 = vpack.c.bf16 %v109_v16, %v108_v14 }
  0x96   :  { %v115_v18 = vsel %vm70_vm0, %v110_v17, 0 }
  0x97   :  { %124 = vmatpush.bf16.xpose.msra.mxu2 %v115_v18 }
  0x9e   :  { %480 = vmatmul.msk.bf16.vlgmr.msra.gmra.mxu2 %vm70_vm0, %v574_v19 }
 0x111   :  { %v102_v20 = vpop.f32.mrf.mxu1 }
 0x112   :  { %133 = vperm.xlu0 %498, %v102_v20  }
 0x119   :  { %v104_v21 = vpop.f32.mrf.mxu1 }
 0x11a   :  { %138 = vperm.xlu0 %498, %v104_v21  }
 0x121   :  { %v126_v28 = vpop.f32.mrf.mxu2 }
 0x129   :  { %v128_v41 = vpop.f32.mrf.mxu2 }
 0x184   :  { %v134_v30 = vpop.permute.xlu0 %133 }
 0x185   :  { %v141_v33 = vadd.f32 %v134_v30, %v126_v28 }
 0x187   :  { %v143_v34 = vadd.f32 %v141_v33, %v649_v29 }
 0x189   :  { %v145_v38 = vmul.f32 0.2, %v143_v34 }
 0x18b   :  { %v147_v40 = vmax.f32 %v143_v34, %v145_v38 }
 0x18c   :  { %v139_v42 = vpop.permute.xlu0 %138 }
 0x18d   :  { %v142_v43 = vadd.f32 %v139_v42, %v128_v41  ;;  %v149_v44 = vsel %vm47_vm1, %v147_v40, -1e+30 }
 0x18e   :  { %v151_v45 = vsel %vm70_vm0, %v149_v44, -inf }
 0x18f   :  { %v144_v46 = vadd.f32 %v142_v43, %v670_v39  ;;  %152 = vmax.xlane.f32.xlu1 %v151_v45 }
 0x191   :  { %v146_v48 = vmul.f32 0.2, %v144_v46 }
 0x193   :  { %v148_v49 = vmax.f32 %v144_v46, %v146_v48 }
 0x195   :  { %v150_v50 = vsel %vm48_vm2, %v148_v49, -1e+30 }
 0x196   :  { %v154_v51 = vsel %vm70_vm0, %v150_v50, -inf }
 0x197   :  { %155 = vmax.xlane.f32.xlu1 %v154_v51 }
 0x202   :  { %v153_v52 = vpop.xlane.xlu1 %152 }
 0x203   :  { %v157_v53 = vsub.f32 %v149_v44, %v153_v52 }
 0x205   :  { %v159_v54 = vmul.f32 1.442695, %v157_v53 }
 0x207   :  { %500 = vpow2.f32 %v159_v54 }
 0x20a   :  { %v156_v55 = vpop.xlane.xlu1 %155 }
 0x20b   :  { %v158_v56 = vsub.f32 %v150_v50, %v156_v55 }
 0x20d   :  { %v501_v57 = vpop.eup %500  ;;  %v161_v58 = vmul.f32 1.442695, %v158_v56 }
 0x20e   :  { %v163_v59 = vsel %vm70_vm0, %v501_v57, 0.0 }
 0x20f   :  { %502 = vpow2.f32 %v161_v58  ;;  %164 = vadd.xlane.f32.xlu2 %v163_v59 }
 0x215   :  { %v503_v60 = vpop.eup %502 }
 0x216   :  { %v166_v61 = vsel %vm70_vm0, %v503_v60, 0.0 }
 0x217   :  { %167 = vadd.xlane.f32.xlu2 %v166_v61 }
 0x282   :  { %v165_v62 = vpop.xlane.xlu2 %164 }
 0x283   :  { %v169_v63 = vmax.f32 %v165_v62, 1e-30 }
 0x285   :  { %504 = vrcp.f32 %v169_v63 }
 0x28a   :  { %v168_v0 = vpop.xlane.xlu2 %167 }
 0x28b   :  { %v170_v1 = vmax.f32 %v168_v0, 1e-30  ;;  %v505_v2 = vpop.eup %504 }
 0x28c   :  { %v173_v4 = vmul.f32 %v505_v2, %v501_v57 }
 0x28d   :  { %506 = vrcp.f32 %v170_v1 }
 0x293   :  { %v507_v3 = vpop.eup %506 }
 0x294   :  { %v174_v6 = vmul.f32 %v507_v3, %v503_v60 }
 0x296   :  { %v175_v7 = vpack.c.bf16 %v174_v6, %v173_v4  ;;  %v41_v6 = vld [vmem:[%s753_s0 + $0x60] sm:$0xff] }
 0x298   :  { %481 = vmatmul.msk.bf16.vlgmr.msra.gmra.mxu3 %vm70_vm0, %v175_v7  ;;  %v42_v7 = vld [vmem:[%s753_s0 + $0x68] sm:$0xff] }
 0x31b   :  { %v189_v9 = vpop.f32.mrf.mxu3 }
 0x31c   :  { %v190_v13 = vadd.f32 %v189_v9, %v689_v10  ;;  %v38_v9 = vld [vmem:[%s753_s0 + $0x50] sm:$0xff] }
 0x31e   :  { %508 = vtanh.f32 %v190_v13  ;;  %v43_v13 = vpack.c.bf16 %v42_v7, %v41_v6 }
 0x320   :  { %327 = vmatpush.bf16.msra.mxu0 %v43_v13 }
 0x323   :  { %v191_v14 = vpop.f32.mrf.mxu3 }
 0x324   :  { %v192_v15 = vadd.f32 %v191_v14, %v689_v10  ;;  %v509_v16 = vpop.eup %508  ;;  %v39_v14 = vld [vmem:[%s753_s0 + $0x58] sm:$0xff]  ;;  %s476_s0 = sld [smem:[#allocation2 + $0x80]] }
 0x326   :  { %510 = vtanh.f32 %v192_v15  ;;  %v40_v15 = vpack.c.bf16 %v39_v14, %v38_v9 }
 0x328   :  { %341 = vmatpush.bf16.msra.mxu1 %v40_v15 }
 0x32c   :  { %v511_v17 = vpop.eup %510 }
 0x32d   :  { %v196_v18 = vpack.c.bf16 %v511_v17, %v509_v16 }
 0x32f   :  { %482 = vmatmul.msk.bf16.vlgmr.msrb.gmra.mxu0 %vm70_vm0, %v196_v18 }
 0x3ac   :  { %v209_v20 = vpop.f32.mrf.mxu0 }
 0x3ad   :  { %v232_v24 = vmul.f32 %v209_v20, %v629_v12 }
 0x3b4   :  { %v211_v21 = vpop.f32.mrf.mxu0 }
 0x3b5   :  { %v214_v25 = vpack.c.bf16 %v211_v21, %v209_v20  ;;  %v233_v26 = vmul.f32 %v211_v21, %v629_v12 }
 0x3b7   :  { %483 = vmatmul.msk.bf16.vlgmr.msrb.gmra.mxu1 %vm70_vm0, %v214_v25  ;;  %307 = vmatpush.bf16.msrb.mxu2 %v214_v25  ;;  %v234_v27 = vpack.c.bf16 %v233_v26, %v232_v24 }
 0x3b9   :  { %v236_v28 = vsel %vm70_vm0, %v234_v27, 0 }
 0x3ba   :  { %245 = vmatpush.bf16.xpose.msrb.mxu3 %v236_v28 }
 0x3c1   :  { %484 = vmatmul.msk.bf16.vlgmr.msrb.gmra.mxu3 %vm70_vm0, %v574_v19 }
 0x3c7   :  { %487 = vmatmul.msk.bf16.vlgmr.msra.gmra.mxu1 %vm70_vm0, %v609_v5  ;;  %v370_v5 = vperm.slane %v626_v11, 2 }
 0x434   :  { %v227_v30 = vpop.f32.mrf.mxu1 }
 0x435   :  { %254 = vperm.xlu0 %498, %v227_v30  }
 0x43c   :  { %v229_v33 = vpop.f32.mrf.mxu1 }
 0x43d   :  { %259 = vperm.xlu1 %499, %v229_v33  }
 0x444   :  { %v247_v34 = vpop.f32.mrf.mxu3  ;;  %v343_v26 = vpop.f32.mrf.mxu1 }
 0x44c   :  { %v249_v41 = vpop.f32.mrf.mxu3  ;;  %v345_v30 = vpop.f32.mrf.mxu1 }
 0x4a7   :  { %v255_v35 = vpop.permute.xlu0 %254 }
 0x4a8   :  { %v262_v36 = vadd.f32 %v255_v35, %v247_v34 }
 0x4aa   :  { %v264_v38 = vadd.f32 %v262_v36, %v649_v29 }
 0x4ac   :  { %v266_v12 = vmul.f32 0.2, %v264_v38 }
 0x4ae   :  { %v268_v40 = vmax.f32 %v264_v38, %v266_v12 }
 0x4af   :  { %v260_v42 = vpop.permute.xlu1 %259 }
 0x4b0   :  { %v263_v43 = vadd.f32 %v260_v42, %v249_v41  ;;  %v270_v44 = vsel %vm47_vm1, %v268_v40, -1e+30  ;;  %v60_v42 = vstv %s476_s0 }
 0x4b1   :  { %v272_v45 = vsel %vm70_vm0, %v270_v44, -inf }
 0x4b2   :  { %v265_v46 = vadd.f32 %v263_v43, %v670_v39  ;;  %273 = vmax.xlane.f32.xlu2 %v272_v45  ;;  %v64_v43 = vstv %s477_s20 }
 0x4b3   :  { %v65_v45 = vmul.f32 %v64_v43, %v645_v23 }
 0x4b4   :  { %v267_v48 = vmul.f32 0.2, %v265_v46 }
 0x4b6   :  { %v269_v49 = vmax.f32 %v265_v46, %v267_v48 }
 0x4b8   :  { %v271_v50 = vsel %vm48_vm2, %v269_v49, -1e+30 }
 0x4b9   :  { %v275_v29 = vsel %vm70_vm0, %v271_v50, -inf }
 0x4ba   :  { %276 = vmax.xlane.f32.xlu0 %v275_v29 }
 0x525   :  { %v274_v51 = vpop.xlane.xlu2 %273 }
 0x526   :  { %v278_v52 = vsub.f32 %v270_v44, %v274_v51  ;;  %v61_v44 = vmul.f32 %v60_v42, %v640_v22  ;;  %v62_v51 = vmul.f32 %v60_v42, %v654_v31 }
 0x528   :  { %v280_v53 = vmul.f32 1.442695, %v278_v52  ;;  %v67_v48 = vadd.f32 %v65_v45, %v61_v44 }
 0x52a   :  { %512 = vpow2.f32 %v280_v53 }
 0x52d   :  { %v277_v54 = vpop.xlane.xlu0 %276 }
 0x52e   :  { %v279_v55 = vsub.f32 %v271_v50, %v277_v54 }
 0x530   :  { %v513_v56 = vpop.eup %512  ;;  %v282_v57 = vmul.f32 1.442695, %v279_v55 }
 0x531   :  { %v284_v58 = vsel %vm70_vm0, %v513_v56, 0.0 }
 0x532   :  { %514 = vpow2.f32 %v282_v57  ;;  %285 = vadd.xlane.f32.xlu2 %v284_v58 }
 0x538   :  { %v515_v39 = vpop.eup %514 }
 0x539   :  { %v287_v59 = vsel %vm70_vm0, %v515_v39, 0.0 }
 0x53a   :  { %288 = vadd.xlane.f32.xlu2 %v287_v59 }
 0x552   :  { %350 = vrot.lane.b32.xlu2 %v619_v8, %s575_s12 }
 0x5a5   :  { %v286_v60 = vpop.xlane.xlu2 %285 }
 0x5a6   :  { %v290_v61 = vmax.f32 %v286_v60, 1e-30 }
 0x5a8   :  { %516 = vrcp.f32 %v290_v61 }
 0x5ad   :  { %v289_v62 = vpop.xlane.xlu2 %288 }
 0x5ae   :  { %v291_v63 = vmax.f32 %v289_v62, 1e-30  ;;  %v517_v0 = vpop.eup %516 }
 0x5af   :  { %v294_v2 = vmul.f32 %v517_v0, %v513_v56 }
 0x5b0   :  { %518 = vrcp.f32 %v291_v63 }
 0x5b5   :  { %v351_v25 = vpop.permute.xlu2 %350 }
 0x5b6   :  { %v519_v1 = vpop.eup %518  ;;  %363 = vmatpush.bf16.msra.mxu3 %v351_v25 }
 0x5b7   :  { %v295_v3 = vmul.f32 %v519_v1, %v515_v39 }
 0x5b9   :  { %v296_v4 = vpack.c.bf16 %v295_v3, %v294_v2 }
 0x5bb   :  { %485 = vmatmul.msk.bf16.vlgmr.msrb.gmra.mxu2 %vm70_vm0, %v296_v4 }
 0x63e   :  { %v309_v8 = vpop.f32.mrf.mxu2 }
 0x63f   :  { %v310_v16 = vadd.f32 %v309_v8, %v689_v10 }
 0x641   :  { %520 = vtanh.f32 %v310_v16 }
 0x646   :  { %v311_v17 = vpop.f32.mrf.mxu2 }
 0x647   :  { %v312_v18 = vadd.f32 %v311_v17, %v689_v10  ;;  %v521_v20 = vpop.eup %520  ;;  %v436_v17 = vperm.slane %v626_v11, 3 }
 0x649   :  { %522 = vtanh.f32 %v312_v18 }
 0x64f   :  { %v523_v21 = vpop.eup %522 }
 0x650   :  { %v316_v24 = vpack.c.bf16 %v523_v21, %v521_v20 }
 0x652   :  { %486 = vmatmul.msk.bf16.vlgmr.msra.gmra.mxu0 %vm70_vm0, %v316_v24 }
 0x6cf   :  { %v329_v27 = vpop.f32.mrf.mxu0 }
 0x6d0   :  { %v344_v28 = vadd.f32 %v343_v26, %v329_v27 }
 0x6d2   :  { %v371_v35 = vmul.f32 %v370_v5, %v344_v28 }
 0x6d7   :  { %v331_v33 = vpop.f32.mrf.mxu0 }
 0x6d8   :  { %v346_v34 = vadd.f32 %v345_v30, %v331_v33 }
 0x6da   :  { %v348_v36 = vpack.c.bf16 %v346_v34, %v344_v28  ;;  %v372_v10 = vmul.f32 %v370_v5, %v346_v34 }
 0x6dc   :  { %v373_v38 = vpack.c.bf16 %v372_v10, %v371_v35  ;;  %488 = vmatmul.msk.bf16.vlgmr.msra.gmra.mxu3 %vm70_vm0, %v348_v36  ;;  %447 = vmatpush.bf16.msrb.mxu0 %v348_v36 }
 0x6de   :  { %v375_v12 = vsel %vm70_vm0, %v373_v38, 0 }
 0x6df   :  { %384 = vmatpush.bf16.xpose.msra.mxu2 %v375_v12 }
 0x6e6   :  { %489 = vmatmul.msk.bf16.vlgmr.msra.gmra.mxu2 %vm70_vm0, %v574_v19  ;;  %v66_v19 = vmul.f32 %v64_v43, %v659_v32 }
 0x6e8   :  { %v68_v53 = vadd.f32 %v66_v19, %v62_v51 }
 0x75f   :  { %v365_v40 = vpop.f32.mrf.mxu3 }
 0x760   :  { %393 = vperm.xlu1 %499, %v365_v40  }
 0x767   :  { %v367_v41 = vpop.f32.mrf.mxu3 }
 0x768   :  { %398 = vperm.xlu1 %499, %v367_v41  }
 0x769   :  { %v386_v46 = vpop.f32.mrf.mxu2 }
 0x771   :  { %v388_v55 = vpop.f32.mrf.mxu2 }
 0x7d2   :  { %v394_v49 = vpop.permute.xlu1 %393 }
 0x7d3   :  { %v401_v50 = vadd.f32 %v394_v49, %v386_v46 }
 0x7d5   :  { %v403_v29 = vadd.f32 %v401_v50, %v67_v48 }
 0x7d7   :  { %v405_v52 = vmul.f32 0.2, %v403_v29 }
 0x7d9   :  { %v407_v54 = vmax.f32 %v403_v29, %v405_v52 }
 0x7da   :  { %v399_v56 = vpop.permute.xlu1 %398 }
 0x7db   :  { %v402_v57 = vadd.f32 %v399_v56, %v388_v55  ;;  %v409_v22 = vsel %vm47_vm1, %v407_v54, -1e+30 }
 0x7dc   :  { %v411_v23 = vsel %vm70_vm0, %v409_v22, -inf }
 0x7dd   :  { %v404_v58 = vadd.f32 %v402_v57, %v68_v53  ;;  %412 = vmax.xlane.f32.xlu1 %v411_v23 }
 0x7df   :  { %v406_v39 = vmul.f32 0.2, %v404_v58 }
 0x7e1   :  { %v408_v59 = vmax.f32 %v404_v58, %v406_v39 }
 0x7e3   :  { %v410_v31 = vsel %vm48_vm2, %v408_v59, -1e+30 }
 0x7e4   :  { %v414_v32 = vsel %vm70_vm0, %v410_v31, -inf }
 0x7e5   :  { %415 = vmax.xlane.f32.xlu2 %v414_v32 }
 0x850   :  { %v413_v60 = vpop.xlane.xlu1 %412 }
 0x851   :  { %v417_v61 = vsub.f32 %v409_v22, %v413_v60 }
 0x853   :  { %v419_v62 = vmul.f32 1.442695, %v417_v61 }
 0x855   :  { %524 = vpow2.f32 %v419_v62 }
 0x858   :  { %v416_v63 = vpop.xlane.xlu2 %415 }
 0x859   :  { %v418_v0 = vsub.f32 %v410_v31, %v416_v63 }
 0x85b   :  { %v525_v37 = vpop.eup %524  ;;  %v421_v1 = vmul.f32 1.442695, %v418_v0 }
 0x85c   :  { %v423_v2 = vsel %vm70_vm0, %v525_v37, 0.0 }
 0x85d   :  { %526 = vpow2.f32 %v421_v1  ;;  %424 = vadd.xlane.f32.xlu0 %v423_v2 }
 0x863   :  { %v527_v3 = vpop.eup %526 }
 0x864   :  { %v426_v4 = vsel %vm70_vm0, %v527_v3, 0.0 }
 0x865   :  { %427 = vadd.xlane.f32.xlu0 %v426_v4 }
 0x8d0   :  { %v425_v47 = vpop.xlane.xlu0 %424 }
 0x8d1   :  { %v429_v6 = vmax.f32 %v425_v47, 1e-30 }
 0x8d3   :  { %528 = vrcp.f32 %v429_v6 }
 0x8d8   :  { %v428_v7 = vpop.xlane.xlu0 %427 }
 0x8d9   :  { %v430_v9 = vmax.f32 %v428_v7, 1e-30  ;;  %v529_v13 = vpop.eup %528 }
 0x8da   :  { %v433_v15 = vmul.f32 %v529_v13, %v525_v37 }
 0x8db   :  { %530 = vrcp.f32 %v430_v9 }
 0x8e1   :  { %v531_v14 = vpop.eup %530 }
 0x8e2   :  { %v434_v8 = vmul.f32 %v531_v14, %v527_v3 }
 0x8e4   :  { %v435_v16 = vpack.c.bf16 %v434_v8, %v433_v15 }
 0x8e6   :  { %490 = vmatmul.msk.bf16.vlgmr.msrb.gmra.mxu0 %vm70_vm0, %v435_v16 }
 0x963   :  { %v449_v18 = vpop.f32.mrf.mxu0 }
 0x964   :  { %v450_v20 = vadd.f32 %v449_v18, %v436_v17 }
 0x966   :  { %454 = vst.msk [vmem:[#allocation5] sm:$0xff] %vm70_vm0, %v450_v20 }
 0x96b   :  { %v451_v21 = vpop.f32.mrf.mxu0 }
 0x96c   :  { %v452_v24 = vadd.f32 %v451_v21, %v436_v17 }
 0x96e   :  { %455 = vst.msk [vmem:[#allocation5 + $0x8] sm:$0xff] %vm70_vm0, %v452_v24 }
 0x96f   :  { %468 = dma.vmem_to_hbm [thread:$0]  %s461_s22, 256, %s463_s25, [#allocation3], %s577_s26, %s577_s26, %s578_s27  }
 0x970   :  { %570 = dma.done.wait [#allocation3], 256  }
 0x971   :  { %571 = vsyncadd [#allocation3], 4294967040 }
 0x972   :  { %473 = vsyncpa [#allocation3], 1 }
 0x973   :  { %474 = vsyncpa [#allocation4], 1 }

</bundles_post_ra>
